<compile_context>
chip_gen: v6e
topology: v6e:2x2x1
jax: 0.10.0
libtpu: 0.0.40
codegen_flags: <defaults>
</compile_context>

<pallas_src>
import jax
import jax.numpy as jnp
from jax.experimental import pallas as pl
from jax.experimental.pallas import tpu as pltpu

EMBED_DIM = 300   # hard-coded in the PyTorch module (nn.Linear(300, 300))
EMBED_PAD = 384   # 300 padded up to a multiple of the 128-lane vreg width


# ----------------------------------------------------------------------------
# Pallas kernel: the whole hot path for one decode step.
# ----------------------------------------------------------------------------
def _decoder_kernel(
    # inputs -----------------------------------------------------------------
    ids_ref,      # VMEM (B, 1)       int32  token ids
    y_ref,        # SMEM (1, 1)       f32    branch-mix gate
    hn_ref,       # VMEM (B, H)       f32
    h_ref,        # VMEM (B, H)       f32
    c_ref,        # VMEM (B, H)       f32
    wf1_ref,      # VMEM (VP+H, EP)   bf16   fused [emb@W1^T ; 0 ; W2^T]
    bf1_ref,      # VMEM (1, EP)      f32    b1 + b2 (zero padded)
    wg_ref,       # VMEM (EP+H, 8H)   bf16   fused, gate-interleaved columns
    bg_ref,       # VMEM (1, 8H)      f32    gate-interleaved biases
    linw_ref,     # VMEM (1, H)       f32
    linb_ref,     # VMEM (1, 1)       f32
    # outputs ----------------------------------------------------------------
    out_ref,      # VMEM (B, OUT_W)   f32    [h_mix | c_mix | prob (broadcast)]
    # scratch ----------------------------------------------------------------
    x2_slab,      # VMEM (B, EP+H)    bf16   persistent staging slab for GEMM2
):
    B = h_ref.shape[0]
    H = h_ref.shape[1]
    EP = wf1_ref.shape[1]
    K1 = wf1_ref.shape[0]
    VP = K1 - H

    y = y_ref[0, 0]                                    # scalar from SMEM
    ids = ids_ref[...]                                 # (B, 1) int32

    # ---- GEMM 1: embedding lookup + W1 + W2 + tanh, all in one MXU pass -----
    # x1 = [onehot(VP) | hn(H)]  (bf16).  The one-hot is exact in bf16, so the
    # embedding row selection is exact; emb@W1^T was pre-fused into wf1 at init.
    lane_v = jax.lax.broadcasted_iota(jnp.int32, (B, VP), 1)
    onehot = (lane_v == ids).astype(jnp.bfloat16)      # (B, VP)
    x1 = jnp.concatenate([onehot, hn_ref[...].astype(jnp.bfloat16)], axis=1)
    inputt = jnp.tanh(
        jnp.dot(x1, wf1_ref[...], preferred_element_type=jnp.float32)
        + bf1_ref[...]
    )                                                  # (B, EP) f32, pad lanes == 0

    # ---- GEMM 2: both LSTM branches' gates in a single MXU pass -------------
    # Stage [inputt | h] in a bf16 VMEM slab (128-aligned lane offsets) instead of
    # a f32 concat + repack.
    x2_slab[:, :EP] = inputt.astype(jnp.bfloat16)
    x2_slab[:, EP:] = h_ref[...].astype(jnp.bfloat16)
    gates = (
        jnp.dot(x2_slab[...], wg_ref[...], preferred_element_type=jnp.float32)
        + bg_ref[...]
    )                                                  # (B, 8H) f32

    # Full-width activations (EUP has slack); gate columns are interleaved as
    # [i0 i1 | f0 f1 | g0 g1 | o0 o1] so each gate is a 64-lane block covering
    # both branches at once.
    sg = jax.nn.sigmoid(gates)
    tg = jnp.tanh(gates)
    i_g = sg[:, 0 * H:2 * H]
    f_g = sg[:, 2 * H:4 * H]
    g_g = tg[:, 4 * H:6 * H]
    o_g = sg[:, 6 * H:8 * H]

    c_in = c_ref[...]
    c_pair = jnp.concatenate([c_in, c_in], axis=1)     # (B, 2H) = [c | c]
    c_new = f_g * c_pair + i_g * g_g                   # (B, 2H) = [c0 | c1]
    h_new = o_g * jnp.tanh(c_new)                      # (B, 2H) = [h0 | h1]

    # ---- y-mix of the two branches: per-lane weight vector + fold -----------
    lane_m = jax.lax.broadcasted_iota(jnp.int32, (1, 2 * H), 1)
    wmix = jnp.where(lane_m < H, 1.0 - y, y)           # (1, 2H)
    hw = wmix * h_new
    cw = wmix * c_new
    h_mix = hw[:, :H] + hw[:, H:]                      # (B, H)
    c_mix = cw[:, :H] + cw[:, H:]                      # (B, H)

    # ---- final Linear(H, 1) + sigmoid on the VPU/XLU (no MXU round trip) ----
    logits = jnp.sum(h_mix * linw_ref[...], axis=-1, keepdims=True) + linb_ref[...]
    prob = jax.nn.sigmoid(logits)                      # (B, 1)

    # ---- single lane-dense packed output store -------------------------------
    pad_w = out_ref.shape[1] - 2 * H
    out_ref[...] = jnp.concatenate(
        [h_mix, c_mix, jnp.broadcast_to(prob, (B, pad_w))], axis=1
    )


# ----------------------------------------------------------------------------
# Wrapper: parameter plumbing + pallas_call.
# ----------------------------------------------------------------------------
@jax.jit
def decoder_forward(params, x, h, c, hn, y):
    """x: (B,) int32; h, c, hn: (1, B, H) f32; y: scalar f32."""
    B = x.shape[0]
    H = h.shape[-1]
    EP = params["wf1"].shape[1]
    K2 = params["wg"].shape[0]
    OUT_W = ((2 * H + 1 + 127) // 128) * 128           # lane-dense packed output

    h2, c2, hn2 = h[0], c[0], hn[0]
    y2 = jnp.asarray(y, jnp.float32).reshape(1, 1)
    ids = x.astype(jnp.int32).reshape(B, 1)

    smem = pl.BlockSpec(memory_space=pltpu.MemorySpace.SMEM)
    vmem = pl.BlockSpec(memory_space=pltpu.MemorySpace.VMEM)

    slab = pl.pallas_call(
        _decoder_kernel,
        out_shape=jax.ShapeDtypeStruct((B, OUT_W), jnp.float32),
        in_specs=[
            vmem, smem,                 # ids, y
            vmem, vmem, vmem,           # hn, h, c
            vmem, vmem,                 # wf1, bf1
            vmem, vmem,                 # wg,  bg
            vmem, vmem,                 # lin_w, lin_b
        ],
        out_specs=vmem,
        scratch_shapes=[
            pltpu.VMEM((B, K2), jnp.bfloat16),          # bf16 staging slab for GEMM2
        ],
    )(ids, y2, hn2, h2, c2,
      params["wf1"], params["bf1"], params["wg"], params["bg"],
      params["lin_w"], params["lin_b"])

    out = slab[:, 2 * H:2 * H + 1]
    h_new = slab[:, :H][None]
    c_new = slab[:, H:2 * H][None]
    return out, h_new, c_new


# ----------------------------------------------------------------------------
# Deterministic parameter construction (synthetic, matches PyTorch shapes).
# Returns (kernel_params, ref_params).
# ----------------------------------------------------------------------------
def init_params(key, vocab_size, hidden_size):
    H = hidden_size
    E = EMBED_DIM
    EP = EMBED_PAD
    VP = ((vocab_size + 7) // 8) * 8          # padded vocab lanes for the one-hot
    ks = jax.random.split(key, 16)

    def rnd(k, shape, scale=0.1):
        return (scale * jax.random.normal(k, shape)).astype(jnp.float32)

    embedding = rnd(ks[0], (vocab_size, E))

    # nn.Linear stores (out_features, in_features).
    w1 = rnd(ks[1], (E, E)); b1 = rnd(ks[2], (E,))
    w2 = rnd(ks[3], (E, H)); b2 = rnd(ks[4], (E,))

    # nn.LSTM: weight_ih (4H, in), weight_hh (4H, H); gate order i, f, g, o.
    wih0 = rnd(ks[5], (4 * H, E)); whh0 = rnd(ks[6], (4 * H, H))
    bih0 = rnd(ks[7], (4 * H,));   bhh0 = rnd(ks[8], (4 * H,))
    wih1 = rnd(ks[9], (4 * H, E)); whh1 = rnd(ks[10], (4 * H, H))
    bih1 = rnd(ks[11], (4 * H,));  bhh1 = rnd(ks[12], (4 * H,))

    lin_w = jax.random.normal(ks[13], (1, H)).astype(jnp.float32)   # .normal_(0, 1)
    lin_b = rnd(ks[14], (1,))

    # ---------------- kernel-side fused / padded layouts ----------------
    # GEMM 1:  [onehot(VP) | hn(H)] (B, VP+H) @ Wf1 (VP+H, EP)
    #   rows 0..V-1   : embedding @ W1^T   (embedding lookup folded into the weight)
    #   rows VP..VP+H : W2^T
    emb_w1 = (embedding @ w1.T).astype(jnp.float32)     # (V, E), precomputed in f32
    wf1 = jnp.zeros((VP + H, EP), jnp.float32)
    wf1 = wf1.at[:vocab_size, :E].set(emb_w1)
    wf1 = wf1.at[VP:, :E].set(w2.T)
    bf1 = jnp.zeros((1, EP), jnp.float32).at[0, :E].set(b1 + b2)

    # GEMM 2:  [inputt | h] (B, EP+H) @ Wg (EP+H, 8H)
    # Column layout is gate-interleaved: [i0 i1 | f0 f1 | g0 g1 | o0 o1] (32 lanes each)
    # so both branches' cell math runs as full-width 64-lane ops in the kernel.
    wg = jnp.zeros((EP + H, 8 * H), jnp.float32)
    bg = jnp.zeros((1, 8 * H), jnp.float32)
    branches = [(wih0, whh0, bih0, bhh0), (wih1, whh1, bih1, bhh1)]
    for b_idx, (wih, whh, bih, bhh) in enumerate(branches):
        for g_idx in range(4):                          # PyTorch gate order i, f, g, o
            col0 = g_idx * 2 * H + b_idx * H
            cols = slice(col0, col0 + H)
            rows = slice(g_idx * H, (g_idx + 1) * H)
            wg = wg.at[:E, cols].set(wih[rows, :].T)
            wg = wg.at[EP:, cols].set(whh[rows, :].T)
            bg = bg.at[0, cols].set(bih[rows] + bhh[rows])

    kernel_params = {
        "wf1": wf1.astype(jnp.bfloat16),      # bf16 weights, f32 MXU accumulate
        "bf1": bf1,
        "wg": wg.astype(jnp.bfloat16),
        "bg": bg,
        "lin_w": lin_w,                       # consumed on the VPU
        "lin_b": lin_b[None, :],
    }
    ref_params = {
        "embedding": embedding,
        "w1": w1, "b1": b1, "w2": w2, "b2": b2,
        "wih0": wih0, "whh0": whh0, "bih0": bih0, "bhh0": bhh0,
        "wih1": wih1, "whh1": whh1, "bih1": bih1, "bhh1": bhh1,
        "lin_w": lin_w, "lin_b": lin_b,
    }
    return kernel_params, ref_params


# ----------------------------------------------------------------------------
# Pure-JAX f32 reference (correctness check for the kernel).
# ----------------------------------------------------------------------------
def decoder_reference(params, x, h, c, hn, y):
    H = params["whh0"].shape[1]
    emb = jnp.take(params["embedding"], x, axis=0)
    hn2, h2, c2 = hn[0], h[0], c[0]
    inputt = jnp.tanh(emb @ params["w1"].T + params["b1"]
                      + hn2 @ params["w2"].T + params["b2"])

    def cell(wih, whh, bih, bhh):
        gates = inputt @ wih.T + bih + h2 @ whh.T + bhh
        i_g = jax.nn.sigmoid(gates[:, 0 * H:1 * H])
        f_g = jax.nn.sigmoid(gates[:, 1 * H:2 * H])
        g_g = jnp.tanh(gates[:, 2 * H:3 * H])
        o_g = jax.nn.sigmoid(gates[:, 3 * H:4 * H])
        c_new = f_g * c2 + i_g * g_g
        return o_g * jnp.tanh(c_new), c_new

    h0, c0 = cell(params["wih0"], params["whh0"], params["bih0"], params["bhh0"])
    h1, c1 = cell(params["wih1"], params["whh1"], params["bih1"], params["bhh1"])
    h_mix = (1.0 - y) * h0 + y * h1
    c_mix = (1.0 - y) * c0 + y * c1
    out = jax.nn.sigmoid(h_mix @ params["lin_w"].T + params["lin_b"])
    return out, h_mix[None], c_mix[None]


if __name__ == "__main__":
    vocab_size = 50
    hidden_size = 32
    batch = 8

    key = jax.random.PRNGKey(0)
    kp, kx, kh, kc, khn = jax.random.split(key, 5)

    kparams, rparams = init_params(kp, vocab_size, hidden_size)

    x = jax.random.randint(kx, (batch,), 0, vocab_size, dtype=jnp.int32)
    h = (0.1 * jax.random.normal(kh, (1, batch, hidden_size))).astype(jnp.float32)
    c = (0.1 * jax.random.normal(kc, (1, batch, hidden_size))).astype(jnp.float32)
    hn = (0.1 * jax.random.normal(khn, (1, batch, hidden_size))).astype(jnp.float32)
    y = jnp.float32(0.25)

    out, h_new, c_new = decoder_forward(kparams, x, h, c, hn, y)
    jax.block_until_ready((out, h_new, c_new))

    ref_out, ref_h, ref_c = decoder_reference(rparams, x, h, c, hn, y)
    assert out.shape == (batch, 1)
    assert h_new.shape == (1, batch, hidden_size)
    assert c_new.shape == (1, batch, hidden_size)
    # bf16 weights in the kernel -> tolerance loosened vs the f32 reference.
    assert jnp.allclose(out, ref_out, atol=2e-2, rtol=2e-2)
    assert jnp.allclose(h_new, ref_h, atol=2e-2, rtol=2e-2)
    assert jnp.allclose(c_new, ref_c, atol=2e-2, rtol=2e-2)

    print("KERNEL_OK")
</pallas_src>

<mosaic_0001>
module attributes {stable_mosaic.version = 11 : i64} {
  func.func @_decoder_kernel(%arg0: memref<8x1xi32, #tpu.memory_space<vmem>>, %arg1: memref<1x1xf32, #tpu.memory_space<smem>>, %arg2: memref<8x32xf32, #tpu.memory_space<vmem>>, %arg3: memref<8x32xf32, #tpu.memory_space<vmem>>, %arg4: memref<8x32xf32, #tpu.memory_space<vmem>>, %arg5: memref<88x384xbf16, #tpu.memory_space<vmem>>, %arg6: memref<1x384xf32, #tpu.memory_space<vmem>>, %arg7: memref<416x256xbf16, #tpu.memory_space<vmem>>, %arg8: memref<1x256xf32, #tpu.memory_space<vmem>>, %arg9: memref<1x32xf32, #tpu.memory_space<vmem>>, %arg10: memref<1x1xf32, #tpu.memory_space<vmem>>, %arg11: memref<8x128xf32, #tpu.memory_space<vmem>>, %arg12: memref<8x416xbf16, #tpu.memory_space<vmem>>) attributes {dimension_semantics = [], scalar_prefetch = 0 : i64, scratch_operands = 1 : i64, tpu.core_type = #tpu.core_type<tc>} {
    %c0 = arith.constant 0 : index
    %c0_0 = arith.constant 0 : index
    %0 = memref.load %arg1[%c0, %c0_0] : memref<1x1xf32, #tpu.memory_space<smem>>
    %c0_1 = arith.constant 0 : index
    %c0_2 = arith.constant 0 : index
    %1 = vector.load %arg0[%c0_1, %c0_2] : memref<8x1xi32, #tpu.memory_space<vmem>>, vector<8x1xi32>
    %2 = tpu.iota {dimensions = array<i32: 1>} : vector<8x56xi32>
    %3 = vector.broadcast %1 : vector<8x1xi32> to vector<8x56xi32>
    %4 = arith.cmpi eq, %2, %3 : vector<8x56xi32>
    %5 = arith.extui %4 : vector<8x56xi1> to vector<8x56xi32>
    %6 = arith.sitofp %5 : vector<8x56xi32> to vector<8x56xf32>
    %7 = arith.truncf %6 : vector<8x56xf32> to vector<8x56xbf16>
    %c0_3 = arith.constant 0 : index
    %c0_4 = arith.constant 0 : index
    %8 = vector.load %arg2[%c0_3, %c0_4] : memref<8x32xf32, #tpu.memory_space<vmem>>, vector<8x32xf32>
    %9 = arith.truncf %8 : vector<8x32xf32> to vector<8x32xbf16>
    %10 = tpu.concatenate %7, %9 in 1 : vector<8x56xbf16>, vector<8x32xbf16> -> vector<8x88xbf16>
    %c0_5 = arith.constant 0 : index
    %c0_6 = arith.constant 0 : index
    %11 = vector.load %arg5[%c0_5, %c0_6] : memref<88x384xbf16, #tpu.memory_space<vmem>>, vector<88x384xbf16>
    %cst = arith.constant dense<0.000000e+00> : vector<8x384xf32>
    %12 = tpu.matmul %10, %11, %cst {dimension_numbers = #tpu.dot_dimension_numbers<[1], [0], [0], [1], [0, 0, 1, 1], [], []>} : vector<8x88xbf16>, vector<88x384xbf16>, vector<8x384xf32> -> vector<8x384xf32>
    %c0_7 = arith.constant 0 : index
    %c0_8 = arith.constant 0 : index
    %13 = vector.load %arg6[%c0_7, %c0_8] : memref<1x384xf32, #tpu.memory_space<vmem>>, vector<1x384xf32>
    %14 = vector.broadcast %13 : vector<1x384xf32> to vector<8x384xf32>
    %15 = arith.addf %12, %14 : vector<8x384xf32>
    %16 = math.tanh %15 : vector<8x384xf32>
    %17 = arith.truncf %16 : vector<8x384xf32> to vector<8x384xbf16>
    %c0_9 = arith.constant 0 : index
    %c0_10 = arith.constant 0 : index
    %18 = vector.load %arg12[%c0_9, %c0_10] : memref<8x416xbf16, #tpu.memory_space<vmem>>, vector<8x384xbf16>
    tpu.vector_store %arg12[%c0_9, %c0_10], %17 {strides = array<i32>} : memref<8x416xbf16, #tpu.memory_space<vmem>>, vector<8x384xbf16>,
    %c0_11 = arith.constant 0 : index
    %c0_12 = arith.constant 0 : index
    %19 = vector.load %arg3[%c0_11, %c0_12] : memref<8x32xf32, #tpu.memory_space<vmem>>, vector<8x32xf32>
    %20 = arith.truncf %19 : vector<8x32xf32> to vector<8x32xbf16>
    %c0_13 = arith.constant 0 : index
    %c384 = arith.constant 384 : index
    %21 = vector.load %arg12[%c0_13, %c384] : memref<8x416xbf16, #tpu.memory_space<vmem>>, vector<8x32xbf16>
    tpu.vector_store %arg12[%c0_13, %c384], %20 {strides = array<i32>} : memref<8x416xbf16, #tpu.memory_space<vmem>>, vector<8x32xbf16>,
    %c0_14 = arith.constant 0 : index
    %c0_15 = arith.constant 0 : index
    %22 = vector.load %arg12[%c0_14, %c0_15] : memref<8x416xbf16, #tpu.memory_space<vmem>>, vector<8x416xbf16>
    %c0_16 = arith.constant 0 : index
    %c0_17 = arith.constant 0 : index
    %23 = vector.load %arg7[%c0_16, %c0_17] : memref<416x256xbf16, #tpu.memory_space<vmem>>, vector<416x256xbf16>
    %cst_18 = arith.constant dense<0.000000e+00> : vector<8x256xf32>
    %24 = tpu.matmul %22, %23, %cst_18 {dimension_numbers = #tpu.dot_dimension_numbers<[1], [0], [0], [1], [0, 0, 1, 1], [], []>} : vector<8x416xbf16>, vector<416x256xbf16>, vector<8x256xf32> -> vector<8x256xf32>
    %c0_19 = arith.constant 0 : index
    %c0_20 = arith.constant 0 : index
    %25 = vector.load %arg8[%c0_19, %c0_20] : memref<1x256xf32, #tpu.memory_space<vmem>>, vector<1x256xf32>
    %26 = vector.broadcast %25 : vector<1x256xf32> to vector<8x256xf32>
    %27 = arith.addf %24, %26 : vector<8x256xf32>
    %28 = arith.negf %27 : vector<8x256xf32>
    %29 = math.exp %28 : vector<8x256xf32>
    %cst_21 = arith.constant 1.000000e+00 : f32
    %30 = vector.broadcast %cst_21 : f32 to vector<8x256xf32>
    %31 = arith.addf %30, %29 : vector<8x256xf32>
    %32 = arith.divf %30, %31 : vector<8x256xf32>
    %33 = math.tanh %27 : vector<8x256xf32>
    %34 = vector.extract_strided_slice %32 {offsets = [0, 0], sizes = [8, 64], strides = [1, 1]} : vector<8x256xf32> to vector<8x64xf32>
    %35 = vector.extract_strided_slice %32 {offsets = [0, 64], sizes = [8, 64], strides = [1, 1]} : vector<8x256xf32> to vector<8x64xf32>
    %36 = vector.extract_strided_slice %33 {offsets = [0, 128], sizes = [8, 64], strides = [1, 1]} : vector<8x256xf32> to vector<8x64xf32>
    %37 = vector.extract_strided_slice %32 {offsets = [0, 192], sizes = [8, 64], strides = [1, 1]} : vector<8x256xf32> to vector<8x64xf32>
    %c0_22 = arith.constant 0 : index
    %c0_23 = arith.constant 0 : index
    %38 = vector.load %arg4[%c0_22, %c0_23] : memref<8x32xf32, #tpu.memory_space<vmem>>, vector<8x32xf32>
    %39 = tpu.concatenate %38, %38 in 1 : vector<8x32xf32>, vector<8x32xf32> -> vector<8x64xf32>
    %40 = arith.mulf %35, %39 : vector<8x64xf32>
    %41 = arith.mulf %34, %36 : vector<8x64xf32>
    %42 = arith.addf %40, %41 : vector<8x64xf32>
    %43 = math.tanh %42 : vector<8x64xf32>
    %44 = arith.mulf %37, %43 : vector<8x64xf32>
    %45 = tpu.iota {dimensions = array<i32: 1>} : vector<1x64xi32>
    %c32_i32 = arith.constant 32 : i32
    %46 = vector.broadcast %c32_i32 : i32 to vector<1x64xi32>
    %47 = arith.cmpi slt, %45, %46 : vector<1x64xi32>
    %cst_24 = arith.constant 1.000000e+00 : f32
    %48 = arith.subf %cst_24, %0 : f32
    %49 = vector.broadcast %48 : f32 to vector<1x64xf32>
    %50 = vector.broadcast %0 : f32 to vector<1x64xf32>
    %51 = arith.select %47, %49, %50 : vector<1x64xi1>, vector<1x64xf32>
    %52 = vector.broadcast %51 : vector<1x64xf32> to vector<8x64xf32>
    %53 = arith.mulf %52, %44 : vector<8x64xf32>
    %54 = vector.broadcast %51 : vector<1x64xf32> to vector<8x64xf32>
    %55 = arith.mulf %54, %42 : vector<8x64xf32>
    %56 = vector.extract_strided_slice %53 {offsets = [0, 0], sizes = [8, 32], strides = [1, 1]} : vector<8x64xf32> to vector<8x32xf32>
    %57 = vector.extract_strided_slice %53 {offsets = [0, 32], sizes = [8, 32], strides = [1, 1]} : vector<8x64xf32> to vector<8x32xf32>
    %58 = arith.addf %56, %57 : vector<8x32xf32>
    %59 = vector.extract_strided_slice %55 {offsets = [0, 0], sizes = [8, 32], strides = [1, 1]} : vector<8x64xf32> to vector<8x32xf32>
    %60 = vector.extract_strided_slice %55 {offsets = [0, 32], sizes = [8, 32], strides = [1, 1]} : vector<8x64xf32> to vector<8x32xf32>
    %61 = arith.addf %59, %60 : vector<8x32xf32>
    %c0_25 = arith.constant 0 : index
    %c0_26 = arith.constant 0 : index
    %62 = vector.load %arg9[%c0_25, %c0_26] : memref<1x32xf32, #tpu.memory_space<vmem>>, vector<1x32xf32>
    %63 = vector.broadcast %62 : vector<1x32xf32> to vector<8x32xf32>
    %64 = arith.mulf %58, %63 : vector<8x32xf32>
    %cst_27 = arith.constant dense<0.000000e+00> : vector<8xf32>
    %65 = vector.multi_reduction <add>, %64, %cst_27 [1] : vector<8x32xf32> to vector<8xf32>
    %66 = vector.shape_cast %65 : vector<8xf32> to vector<8x1xf32>
    %c0_28 = arith.constant 0 : index
    %c0_29 = arith.constant 0 : index
    %67 = vector.load %arg10[%c0_28, %c0_29] : memref<1x1xf32, #tpu.memory_space<vmem>>, vector<1x1xf32>
    %68 = vector.broadcast %67 : vector<1x1xf32> to vector<8x1xf32>
    %69 = arith.addf %66, %68 : vector<8x1xf32>
    %70 = arith.negf %69 : vector<8x1xf32>
    %71 = math.exp %70 : vector<8x1xf32>
    %cst_30 = arith.constant 1.000000e+00 : f32
    %72 = vector.broadcast %cst_30 : f32 to vector<8x1xf32>
    %73 = arith.addf %72, %71 : vector<8x1xf32>
    %74 = arith.divf %72, %73 : vector<8x1xf32>
    %75 = vector.shape_cast %74 : vector<8x1xf32> to vector<8x1xf32>
    %76 = vector.broadcast %75 : vector<8x1xf32> to vector<8x64xf32>
    %77 = tpu.concatenate %58, %61, %76 in 1 : vector<8x32xf32>, vector<8x32xf32>, vector<8x64xf32> -> vector<8x128xf32>
    %c0_31 = arith.constant 0 : index
    %c0_32 = arith.constant 0 : index
    %78 = vector.load %arg11[%c0_31, %c0_32] : memref<8x128xf32, #tpu.memory_space<vmem>>, vector<8x128xf32>
    tpu.vector_store %arg11[%c0_31, %c0_32], %77 {strides = array<i32>} : memref<8x128xf32, #tpu.memory_space<vmem>>, vector<8x128xf32>,
    return
  }
}

</mosaic_0001>

<bundles_post_ra>
// kernel: decoder_forward.1
= control target key start
LH: loop header
LB: loop body
LE: loop exit
PB: predicated region body
PF: predicated region fallthrough
CT: control target
= control target key end

     0   :  { %s1395_s0 = inlined_call_operand.vmem [shape: s32[8,1], index: 0, kind: input, shape index: {}]   ;;  %s1396_s1 = inlined_call_operand.<no memory space> [shape: f32[1,1], index: 1, kind: input, shape index: {}]   ;;  %s1397_s2 = inlined_call_operand.vmem [shape: f32[8,32], index: 2, kind: input, shape index: {}]   ;;  %s1398_s3 = inlined_call_operand.vmem [shape: f32[8,32], index: 3, kind: input, shape index: {}]   ;;  %s1399_s4 = inlined_call_operand.vmem [shape: f32[8,32], index: 4, kind: input, shape index: {}]   ;;  %s1400_s5 = inlined_call_operand.hbm [shape: bf16[88,384], index: 5, kind: input, shape index: {}]   ;;  %s1401_s6 = inlined_call_operand.hbm [shape: f32[1,384], index: 6, kind: input, shape index: {}]   ;;  %s1402_s7 = inlined_call_operand.hbm [shape: bf16[416,256], index: 7, kind: input, shape index: {}]   ;;  %s1403_s8 = inlined_call_operand.hbm [shape: f32[1,256], index: 8, kind: input, shape index: {}]   ;;  %s1404_s9 = inlined_call_operand.hbm [shape: f32[1,32], index: 9, kind: input, shape index: {}]   ;;  %s1405_s10 = inlined_call_operand.<no memory space> [shape: f32[1,1], index: 10, kind: input, shape index: {}]   ;;  %s1406_s11 = inlined_call_operand.vmem [shape: f32[8,128], index: 11, kind: output, shape index: {}]  }
   0x1   :  { %v17_v0 = vstv %s1405_s10 }
   0x2   :  { %18 = vst [vmem:[#allocation4] sm:$0x1] %v17_v0 }
   0x3   :  { %19 = vsyncpa [#allocation6], 0 }
   0x4   :  { %20 = vsyncpa [#allocation8], 0 }
   0x5   :  { %21 = vsyncpa [#allocation11], 0  ;;  %s1256_s19 = smov [#allocation7]   ;;  %s1257_s21 = smov [#allocation10]  }
   0x6   :  { %s50_s20 = sshll.u32 %s1256_s19, 4  ;;  %s72_s22 = sshll.u32 %s1257_s21, 4  ;;  %s51_s20 = int_to_ptr.vmem [resolvable:$true] %s50_s20  ;;  %s73_s22 = int_to_ptr.vmem [resolvable:$true] %s72_s22 }
   0x7   :  { %s1158_s23 = scalar_lea.vmem %s51_s20, 48  ;;  %s1162_s24 = scalar_lea.vmem %s51_s20, 64 }
   0x8   :  { %p1159_p0 = scmp.ne.s32.totalorder %s51_s20, %s1158_s23  ;;  %p1163_p1 = scmp.lt.s32.totalorder %s51_s20, %s51_s20 }
   0x9   :  { %p1164_p2 = scmp.lt.s32.totalorder %s1162_s24, %s1158_s23 }
   0xb   :  { %p1165_p3 = por %p1164_p2, %p1163_p1 }
   0xd   :  { %p1166_p4 = pnand %p1165_p3, %p1159_p0 }
   0xf   :  { %1169 = shalt.err (!%p1166_p4)
}
  0x10   :  { %53 = dma.hbm_to_vmem [thread:$0]  %s1401_s6, 48, %s51_s20, [#allocation8]  }
  0x11   :  { %s1178_s26 = scalar_lea.vmem %s73_s22, 32  ;;  %p1183_p6 = scmp.lt.s32.totalorder %s73_s22, %s73_s22 }
  0x12   :  { %p1179_p5 = scmp.ne.s32.totalorder %s73_s22, %s1178_s26  ;;  %p1184_p7 = scmp.lt.s32.totalorder %s1178_s26, %s1178_s26 }
  0x14   :  { %p1185_p8 = por %p1184_p7, %p1183_p6 }
  0x16   :  { %p1186_p9 = pnand %p1185_p8, %p1179_p5 }
  0x18   :  { %1189 = shalt.err (!%p1186_p9)
}
  0x19   :  { %75 = dma.hbm_to_vmem [thread:$0]  %s1403_s8, 32, %s73_s22, [#allocation11]  }
  0x1a   :  { %s1258_s29 = smov [#allocation5]  }
  0x1b   :  { %s37_s30 = sshll.u32 %s1258_s29, 4  ;;  %s38_s30 = int_to_ptr.vmem [resolvable:$true] %s37_s30 }
  0x1c   :  { %s1198_s12 = scalar_lea.vmem %s38_s30, 2112  ;;  %p1203_p11 = scmp.lt.s32.totalorder %s38_s30, %s38_s30 }
  0x1d   :  { %p1199_p10 = scmp.ne.s32.totalorder %s38_s30, %s1198_s12  ;;  %p1204_p12 = scmp.lt.s32.totalorder %s1198_s12, %s1198_s12 }
  0x1f   :  { %p1205_p13 = por %p1204_p12, %p1203_p11 }
  0x21   :  { %p1206_p0 = pnand %p1205_p13, %p1199_p10 }
  0x23   :  { %1209 = shalt.err (!%p1206_p0)
}
  0x24   :  { %s1259_s6 = smov 192   ;;  %s1260_s13 = smov 12  }
  0x25   :  { %43 = dma.hbm_to_vmem [thread:$0]  %s1400_s5, 2112, %s38_s30, [#allocation6], %s1259_s6, %s1259_s6, %s1260_s13  }
  0x26   :  { %s1261_s16 = smov [#allocation9]  }
  0x27   :  { %s59_s17 = sshll.u32 %s1261_s16, 4  ;;  %s60_s17 = int_to_ptr.vmem [resolvable:$true] %s59_s17 }
  0x28   :  { %s1218_s8 = scalar_lea.vmem %s60_s17, 6656  ;;  %p1223_p2 = scmp.lt.s32.totalorder %s60_s17, %s60_s17 }
  0x29   :  { %p1219_p1 = scmp.ne.s32.totalorder %s60_s17, %s1218_s8  ;;  %p1224_p3 = scmp.lt.s32.totalorder %s1218_s8, %s1218_s8 }
  0x2b   :  { %p1225_p4 = por %p1224_p3, %p1223_p2 }
  0x2d   :  { %p1226_p5 = pnand %p1225_p4, %p1219_p1 }
  0x2f   :  { %1229 = shalt.err (!%p1226_p5)
}
  0x30   :  { %s1262_s18 = smov 128   ;;  %s1263_s19 = smov 8  }
  0x31   :  { %65 = dma.hbm_to_vmem [thread:$0]  %s1402_s7, 6656, %s60_s17, [#allocation8], %s1262_s18, %s1262_s18, %s1263_s19  }
  0x32   :  { %s1264_s22 = smov [#allocation12]  }
  0x33   :  { %s82_s23 = sshll.u32 %s1264_s22, 4  ;;  %s83_s23 = int_to_ptr.vmem [resolvable:$true] %s82_s23 }
  0x34   :  { %s1238_s5 = scalar_lea.vmem %s83_s23, 16  ;;  %s1242_s24 = scalar_lea.vmem %s83_s23, 32 }
  0x35   :  { %p1239_p6 = scmp.ne.s32.totalorder %s83_s23, %s1238_s5  ;;  %p1243_p7 = scmp.lt.s32.totalorder %s83_s23, %s83_s23 }
  0x36   :  { %p1244_p8 = scmp.lt.s32.totalorder %s1242_s24, %s1238_s5 }
  0x38   :  { %p1245_p9 = por %p1244_p8, %p1243_p7 }
  0x3a   :  { %p1246_p10 = pnand %p1245_p9, %p1239_p6 }
  0x3c   :  { %1249 = shalt.err (!%p1246_p10)
}
  0x3d   :  { %85 = dma.hbm_to_vmem [thread:$0]  %s1404_s9, 16, %s83_s23, [#allocation11]  }
  0x3e   :  { %1250 = dma.done.wait [#allocation6], 2112  }
  0x3f   :  { %1251 = vsyncadd [#allocation6], 4294965184 }
  0x40   :  { %1252 = dma.done.wait [#allocation8], 6704  }
  0x41   :  { %1253 = vsyncadd [#allocation8], 4294960592 }
  0x42   :  { %1254 = dma.done.wait [#allocation11], 48  }
  0x43   :  { %1255 = vsyncadd [#allocation11], 4294967248  ;;  %v1265_v1 = vmov 0   ;;  %v1266_v2 = vmov 0.0   ;;  %v105_v3 = vld [vmem:[%s1395_s0] sm:$0xff]  ;;  %v144_v5 = vld [vmem:[#allocation5 + $0x78] sm:$0xff]  ;;  %v106_v29 = vlaneseq }
  0x44   :  { %1021 = vset.pattern.permute.xlu0 %v1265_v1  ;;  %989 = vmatprep.subr.bf16.mxu1 %v1266_v2  ;;  %v115_v4 = vld [vmem:[%s1397_s2] sm:$0xff]  ;;  %vm254_vm0 = vcmask 1043456   ;;  %v911_v7 = vcombine.high %v144_v5, %v144_v5  ;;  %v910_v8 = vcombine.low %v144_v5, %v144_v5  ;;  %v1025_v9 = vld [vmem:[#allocation5 + $0x80] ss:$0 sps:$4 sm:$0xff]   ;;  %vm1267_vm1 = vmmov 0   ;;  %s1268_s0 = smov 56  }
  0x45   :  { %296 = vmatprep.mubr.bf16.mxu0 %v1265_v1  ;;  %1022 = vset.pattern.permute.xlu1 %v1265_v1  ;;  %v116_v6 = vpack.c.bf16 %v115_v4, %v115_v4  ;;  %v1026_v10 = vld [vmem:[#allocation5 + $0x64] ss:$12 sps:$4 sm:$0xff]   ;;  %v1028_v11 = vld [vmem:[#allocation5 + $0x60] ss:$12 sps:$4 sm:$0xff]   ;;  %v262_v13 = vsel %vm254_vm0, %v1025_v9, 0  ;;  %v1364_v30 = vand.u32 127, %v106_v29 }
  0x46   :  { %109 = vperm.xlu0 %1021, %v105_v3   ;;  %1001 = vmatprep.mubr.msk.bf16.mxu1 %vm1267_vm1, %v1266_v2  ;;  %v256_v12 = vsel %vm254_vm0, %v910_v8, 0  ;;  %v1029_v14 = vld [vmem:[#allocation5 + $0x68] ss:$12 sps:$4 sm:$0xff]   ;;  %v1030_v15 = vld [vmem:[#allocation5 + $0x4c] ss:$12 sps:$4 sm:$0xff]   ;;  %vm120_vm3 = vcmask 457728  }
  0x47   :  { %913 = vmatprep.subr.msk.bf16.mxu0 %vm254_vm0, %v911_v7  ;;  %990 = vmatpush3.bf16.msra.mxu1 %v262_v13  ;;  %v1032_v16 = vld [vmem:[#allocation5 + $0x48] ss:$12 sps:$4 sm:$0xff]   ;;  %v1033_v17 = vld [vmem:[#allocation5 + $0x50] ss:$12 sps:$4 sm:$0xff]   ;;  %v1037_v20 = vld [vmem:[#allocation5 + $0x38] ss:$12 sps:$4 sm:$0xff]  }
  0x48   :  { %269 = vmatpush1.bf16.msra.mxu0 %v256_v12  ;;  %991 = vmatprep.subr.bf16.mxu1 %v1266_v2  ;;  %v1034_v18 = vld [vmem:[#allocation5 + $0x34] ss:$12 sps:$4 sm:$0xff]   ;;  %v1036_v19 = vld [vmem:[#allocation5 + $0x30] ss:$12 sps:$4 sm:$0xff]   ;;  %v1040_v22 = vld [vmem:[#allocation5 + $0x18] ss:$12 sps:$4 sm:$0xff]  }
  0x49   :  { %270 = vmatprep.subr.bf16.mxu0 %v1026_v10  ;;  %v1038_v21 = vld [vmem:[#allocation5 + $0x1c] ss:$12 sps:$4 sm:$0xff]   ;;  %v1041_v23 = vld [vmem:[#allocation5 + $0x20] ss:$12 sps:$4 sm:$0xff]   ;;  %v1042_v24 = vld [vmem:[#allocation5 + $0x4] ss:$12 sps:$4 sm:$0xff]  }
  0x4a   :  { %118 = vrot.lane.b32.xlu0 %v116_v6, %s1268_s0  ;;  %v1044_v25 = vld [vmem:[#allocation5] ss:$12 sps:$4 sm:$0xff]   ;;  %v1045_v26 = vld [vmem:[#allocation5 + $0x8] ss:$12 sps:$4 sm:$0xff]   ;;  %v1048_v27 = vld [vmem:[#allocation9 + $0x74] ss:$8 sps:$4 sm:$0xff]  }
  0x4b   :  { %992 = vmatpush3.bf16.msra.mxu1 %v1029_v14  ;;  %v1066_v28 = vld [vmem:[#allocation9 + $0x174] ss:$8 sps:$4 sm:$0xff]   ;;  %vm251_vm4 = vcmask 719872   ;;  %v1046_v34 = vld [vmem:[#allocation9 + $0x70] ss:$8 sps:$4 sm:$0xff]   ;;  %vm365_vm5 = vcmask 257024  }
  0x4c   :  { %271 = vmatpush1.bf16.msra.mxu0 %v1028_v11  ;;  %993 = vmatprep.subr.bf16.mxu1 %v1266_v2  ;;  %v1064_v35 = vld [vmem:[#allocation9 + $0x170] ss:$8 sps:$4 sm:$0xff]   ;;  %v1051_v37 = vld [vmem:[#allocation9 + $0x64] ss:$8 sps:$4 sm:$0xff]   ;;  %v1049_v40 = vld [vmem:[#allocation9 + $0x60] ss:$8 sps:$4 sm:$0xff]  }
  0x4d   :  { %272 = vmatprep.subr.bf16.mxu0 %v1030_v15  ;;  %v1072_v38 = vld [vmem:[#allocation9 + $0x164] ss:$8 sps:$4 sm:$0xff]   ;;  %v1070_v41 = vld [vmem:[#allocation9 + $0x160] ss:$8 sps:$4 sm:$0xff]   ;;  %v1054_v42 = vld [vmem:[#allocation9 + $0x54] ss:$8 sps:$4 sm:$0xff]  }
  0x4e   :  { %v1078_v43 = vld [vmem:[#allocation9 + $0x154] ss:$8 sps:$4 sm:$0xff]   ;;  %v1052_v44 = vld [vmem:[#allocation9 + $0x50] ss:$8 sps:$4 sm:$0xff]   ;;  %v1057_v46 = vld [vmem:[#allocation9 + $0x44] ss:$8 sps:$4 sm:$0xff]  }
  0x4f   :  { %994 = vmatpush3.bf16.msra.mxu1 %v1033_v17  ;;  %v1076_v45 = vld [vmem:[#allocation9 + $0x150] ss:$8 sps:$4 sm:$0xff]   ;;  %v1055_v47 = vld [vmem:[#allocation9 + $0x40] ss:$8 sps:$4 sm:$0xff]   ;;  %v1060_v48 = vld [vmem:[#allocation9 + $0x34] ss:$8 sps:$4 sm:$0xff]  }
  0x50   :  { %273 = vmatpush1.bf16.msra.mxu0 %v1032_v16  ;;  %995 = vmatprep.subr.bf16.mxu1 %v1266_v2  ;;  %v1058_v49 = vld [vmem:[#allocation9 + $0x30] ss:$8 sps:$4 sm:$0xff]   ;;  %v1063_v50 = vld [vmem:[#allocation9 + $0x24] ss:$8 sps:$4 sm:$0xff]   ;;  %v1061_v51 = vld [vmem:[#allocation9 + $0x20] ss:$8 sps:$4 sm:$0xff]  }
  0x51   :  { %274 = vmatprep.subr.bf16.mxu0 %v1034_v18  ;;  %v1069_v52 = vld [vmem:[#allocation9 + $0x14] ss:$8 sps:$4 sm:$0xff]   ;;  %v1067_v53 = vld [vmem:[#allocation9 + $0x10] ss:$8 sps:$4 sm:$0xff]   ;;  %v1075_v54 = vld [vmem:[#allocation9 + $0x4] ss:$8 sps:$4 sm:$0xff]  }
  0x52   :  { %v1073_v55 = vld [vmem:[#allocation9] ss:$8 sps:$4 sm:$0xff]   ;;  %v1081_v56 = vld [vmem:[#allocation9 + $0xf4] ss:$8 sps:$4 sm:$0xff]   ;;  %v1079_v57 = vld [vmem:[#allocation9 + $0xf0] ss:$8 sps:$4 sm:$0xff]  }
  0x53   :  { %996 = vmatpush3.bf16.msra.mxu1 %v1037_v20  ;;  %v1087_v58 = vld [vmem:[#allocation9 + $0xe4] ss:$8 sps:$4 sm:$0xff]   ;;  %v1085_v59 = vld [vmem:[#allocation9 + $0xe0] ss:$8 sps:$4 sm:$0xff]   ;;  %v1093_v60 = vld [vmem:[#allocation9 + $0xd4] ss:$8 sps:$4 sm:$0xff]  }
  0x54   :  { %275 = vmatpush1.bf16.msra.mxu0 %v1036_v19  ;;  %997 = vmatprep.subr.bf16.mxu1 %v1266_v2  ;;  %v1091_v61 = vld [vmem:[#allocation9 + $0xd0] ss:$8 sps:$4 sm:$0xff]   ;;  %v1084_v62 = vld [vmem:[#allocation9 + $0x144] ss:$8 sps:$4 sm:$0xff]   ;;  %v1082_v63 = vld [vmem:[#allocation9 + $0x140] ss:$8 sps:$4 sm:$0xff]  }
  0x55   :  { %276 = vmatprep.subr.bf16.mxu0 %v1038_v21  ;;  %v1099_v0 = vld [vmem:[#allocation9 + $0xc4] ss:$8 sps:$4 sm:$0xff]   ;;  %v1097_v1 = vld [vmem:[#allocation9 + $0xc0] ss:$8 sps:$4 sm:$0xff]   ;;  %v1088_v3 = vld [vmem:[#allocation9 + $0x130] ss:$8 sps:$4 sm:$0xff]  }
  0x56   :  { %v1105_v4 = vld [vmem:[#allocation9 + $0xb4] ss:$8 sps:$4 sm:$0xff]   ;;  %v1103_v5 = vld [vmem:[#allocation9 + $0xb0] ss:$8 sps:$4 sm:$0xff]   ;;  %v1096_v6 = vld [vmem:[#allocation9 + $0x124] ss:$8 sps:$4 sm:$0xff]  }
  0x57   :  { %998 = vmatpush3.bf16.msra.mxu1 %v1041_v23  ;;  %v1094_v7 = vld [vmem:[#allocation9 + $0x120] ss:$8 sps:$4 sm:$0xff]   ;;  %v1111_v8 = vld [vmem:[#allocation9 + $0xa4] ss:$8 sps:$4 sm:$0xff]   ;;  %v1102_v10 = vld [vmem:[#allocation9 + $0x114] ss:$8 sps:$4 sm:$0xff]  }
  0x58   :  { %277 = vmatpush1.bf16.msra.mxu0 %v1040_v22  ;;  %999 = vmatprep.subr.bf16.mxu1 %v1266_v2  ;;  %v1109_v9 = vld [vmem:[#allocation9 + $0xa0] ss:$8 sps:$4 sm:$0xff]   ;;  %v1100_v11 = vld [vmem:[#allocation9 + $0x110] ss:$8 sps:$4 sm:$0xff]   ;;  %v1117_v12 = vld [vmem:[#allocation9 + $0x94] ss:$8 sps:$4 sm:$0xff]  }
  0x59   :  { %278 = vmatprep.subr.bf16.mxu0 %v1042_v24  ;;  %v1115_v13 = vld [vmem:[#allocation9 + $0x90] ss:$8 sps:$4 sm:$0xff]   ;;  %v1108_v14 = vld [vmem:[#allocation9 + $0x104] ss:$8 sps:$4 sm:$0xff]   ;;  %v1106_v16 = vld [vmem:[#allocation9 + $0x100] ss:$8 sps:$4 sm:$0xff]  }
  0x5a   :  { %v363_v15 = vld [vmem:[%s1398_s3] sm:$0xff]  ;;  %v1112_v20 = vld [vmem:[#allocation9 + $0x190] ss:$8 sps:$4 sm:$0xff]   ;;  %v1114_v21 = vld [vmem:[#allocation9 + $0x194] ss:$8 sps:$4 sm:$0xff]   ;;  %s1269_s30 = smov 32  }
  0x5b   :  { %1000 = vmatpush3.bf16.msra.mxu1 %v1045_v26  ;;  %v364_v17 = vpack.c.bf16 %v363_v15, %v363_v15  ;;  %v1123_v18 = vld [vmem:[#allocation9 + $0x84] ss:$8 sps:$4 sm:$0xff]   ;;  %v1121_v19 = vld [vmem:[#allocation9 + $0x80] ss:$8 sps:$4 sm:$0xff]   ;;  %vm706_vm6 = vcmask 261120   ;;  %s825_s13 = ssub.f32 1.0, %s1396_s1 }
  0x5c   :  { %279 = vmatpush1.bf16.msra.mxu0 %v1044_v25  ;;  %751 = vmatprep.subr.bf16.mxu1 %v1066_v28  ;;  %v1120_v22 = vld [vmem:[#allocation9 + $0x184] ss:$8 sps:$4 sm:$0xff]   ;;  %v1118_v23 = vld [vmem:[#allocation9 + $0x180] ss:$8 sps:$4 sm:$0xff]   ;;  %v149_v25 = vshrl.u32 %v106_v29, 7  ;;  %vm824_vm7 = vcmp.lt.s32.totalorder %v1364_v30, 32 }
  0x5d   :  { %710 = vmatprep.subr.bf16.mxu0 %v1048_v27  ;;  %366 = vst.msk [vmem:[#allocation2 + $0xc] sm:$0xf] %vm365_vm5, %v364_v17  ;;  %v805_v24 = vld [vmem:[%s1399_s4] sm:$0xff]  ;;  %v146_v28 = vld [vmem:[#allocation7] sm:$0x7]  ;;  %s1270_s4 = smov 64  }
  0x5e   :  { %807 = vrot.lane.b32.xlu1 %v805_v24, %s1269_s30  ;;  %v150_v26 = vsub.s32 0, %v149_v25  ;;  %v158_v27 = vsub.s32 2, %v149_v25  ;;  %s1271_s16 = smov 96   ;;  %vm884_vm8 = vcmask 523264  }
  0xc1   :  { %v110_v31 = vpop.permute.xlu0 %109 }
  0xc2   :  { %vm111_vm2 = vcmp.eq.s32.totalorder %v1364_v30, %v110_v31  ;;  %v154_v31 = vsub.s32 1, %v149_v25  ;;  %v978_v30 = vld [vmem:[#allocation4] ss:$0 sm:$0xff] }
  0xc3   :  { %v894_v32 = vsel %vm111_vm2, 1.0, %v1266_v2  ;;  %v1090_v2 = vld [vmem:[#allocation9 + $0x134] ss:$8 sps:$4 sm:$0xff]  }
  0xc4   :  { %v114_v33 = vpack.c.bf16 %v894_v32, %v894_v32  ;;  %v151_v32 = vrot.slane %v146_v28, %v150_v26 }
  0xc5   :  { %v119_v36 = vpop.permute.xlu0 %118 }
  0xc6   :  { %v123_v39 = vsel %vm120_vm3, %v114_v33, %v119_v36  ;;  %v159_v33 = vrot.slane %v146_v28, %v158_v27 }
  0xc7   :  { %914 = vmatmul.mubr.msk.bf16.vlgmr.msra.gmra.mxu0 %vm251_vm4, %v123_v39  ;;  %1002 = vmatmul.mubr.msk.bf16.vlgmr.msra.gmra.mxu1 %vm251_vm4, %v123_v39 }
  0xc8   :  { %711 = vmatpush1.bf16.msra.mxu0 %v1046_v34  ;;  %752 = vmatpush1.bf16.msra.mxu1 %v1064_v35  ;;  %v155_v34 = vrot.slane %v146_v28, %v154_v31 }
  0xc9   :  { %712 = vmatprep.subr.bf16.mxu0 %v1051_v37  ;;  %753 = vmatprep.subr.bf16.mxu1 %v1072_v38 }
  0xcc   :  { %713 = vmatpush1.bf16.msra.mxu0 %v1049_v40  ;;  %754 = vmatpush1.bf16.msra.mxu1 %v1070_v41 }
  0xcd   :  { %714 = vmatprep.subr.bf16.mxu0 %v1054_v42  ;;  %755 = vmatprep.subr.bf16.mxu1 %v1078_v43 }
  0xd0   :  { %715 = vmatpush1.bf16.msra.mxu0 %v1052_v44  ;;  %756 = vmatpush1.bf16.msra.mxu1 %v1076_v45  ;;  %v808_v45 = vpop.permute.xlu1 %807 }
  0xd1   :  { %716 = vmatprep.subr.bf16.mxu0 %v1057_v46  ;;  %757 = vmatprep.subr.bf16.mxu1 %v1084_v62  ;;  %v810_v46 = vsel %vm706_vm6, %v805_v24, %v808_v45  ;;  %v827_v24 = vstv %s1396_s1 }
  0xd2   :  { %812 = vrot.lane.b32.xlu1 %v810_v46, %s1270_s4 }
  0xd4   :  { %717 = vmatpush1.bf16.msra.mxu0 %v1055_v47  ;;  %758 = vmatpush1.bf16.msra.mxu1 %v1082_v63 }
  0xd5   :  { %718 = vmatprep.subr.bf16.mxu0 %v1060_v48  ;;  %759 = vmatprep.subr.bf16.mxu1 %v1090_v2 }
  0xd8   :  { %719 = vmatpush1.bf16.msra.mxu0 %v1058_v49  ;;  %760 = vmatpush1.bf16.msra.mxu1 %v1088_v3 }
  0xd9   :  { %720 = vmatprep.subr.bf16.mxu0 %v1063_v50  ;;  %761 = vmatprep.subr.bf16.mxu1 %v1096_v6 }
  0xdc   :  { %721 = vmatpush1.bf16.msra.mxu0 %v1061_v51  ;;  %762 = vmatpush1.bf16.msra.mxu1 %v1094_v7 }
  0xdd   :  { %722 = vmatprep.subr.bf16.mxu0 %v1069_v52  ;;  %763 = vmatprep.subr.bf16.mxu1 %v1102_v10 }
  0xe0   :  { %723 = vmatpush1.bf16.msra.mxu0 %v1067_v53  ;;  %764 = vmatpush1.bf16.msra.mxu1 %v1100_v11 }
  0xe1   :  { %724 = vmatprep.subr.bf16.mxu0 %v1075_v54  ;;  %765 = vmatprep.subr.bf16.mxu1 %v1108_v14 }
  0xe4   :  { %725 = vmatpush1.bf16.msra.mxu0 %v1073_v55  ;;  %766 = vmatpush1.bf16.msra.mxu1 %v1106_v16 }
  0xe5   :  { %726 = vmatprep.subr.bf16.mxu0 %v1081_v56  ;;  %779 = vmatprep.subr.bf16.mxu1 %v1114_v21  ;;  %v421_v56 = vld [vmem:[#allocation10] sm:$0x3] }
  0xe8   :  { %727 = vmatpush2.bf16.msra.mxu0 %v1079_v57  ;;  %780 = vmatpush2.bf16.msra.mxu1 %v1112_v20 }
  0xe9   :  { %728 = vmatprep.subr.bf16.mxu0 %v1087_v58  ;;  %781 = vmatprep.subr.bf16.mxu1 %v1120_v22  ;;  %v426_v58 = vrot.slane %v421_v56, %v150_v26 }
  0xec   :  { %729 = vmatpush2.bf16.msra.mxu0 %v1085_v59  ;;  %782 = vmatpush2.bf16.msra.mxu1 %v1118_v23  ;;  %v826_v23 = vstv %s825_s13 }
  0xed   :  { %730 = vmatprep.subr.bf16.mxu0 %v1093_v60  ;;  %v828_v25 = vsel %vm824_vm7, %v826_v23, %v827_v24 }
  0xf0   :  { %731 = vmatpush2.bf16.msra.mxu0 %v1091_v61 }
  0xf1   :  { %732 = vmatprep.subr.bf16.mxu0 %v1099_v0 }
  0xf4   :  { %733 = vmatpush2.bf16.msra.mxu0 %v1097_v1 }
  0xf5   :  { %734 = vmatprep.subr.bf16.mxu0 %v1105_v4 }
  0xf8   :  { %735 = vmatpush2.bf16.msra.mxu0 %v1103_v5  ;;  %v430_v5 = vrot.slane %v421_v56, %v154_v31 }
  0xf9   :  { %736 = vmatprep.subr.bf16.mxu0 %v1111_v8 }
  0xfc   :  { %737 = vmatpush2.bf16.msra.mxu0 %v1109_v9 }
  0xfd   :  { %738 = vmatprep.subr.bf16.mxu0 %v1117_v12 }
 0x100   :  { %739 = vmatpush2.bf16.msra.mxu0 %v1115_v13 }
 0x101   :  { %740 = vmatprep.subr.bf16.mxu0 %v1123_v18 }
 0x104   :  { %741 = vmatpush2.bf16.msra.mxu0 %v1121_v19 }
 0x144   :  { %v813_v15 = vpop.permute.xlu1 %812 }
 0x187   :  { %v298_v35 = vpop.f32.mrf.mxu0  ;;  %v339_v36 = vpop.f32.mrf.mxu1 }
 0x188   :  { %v299_v37 = vadd.f32 %v298_v35, %v151_v32  ;;  %v340_v38 = vadd.f32 %v339_v36, %v159_v33  ;;  %v977_v33 = vld [vmem:[#allocation12] ss:$0 sm:$0xff] }
 0x189   :  { %v300_v39 = vpop.f32.mrf.mxu0  ;;  %v1003_v40 = vpop.f32.mrf.mxu1 }
 0x18a   :  { %1126 = vtanh.f32 %v299_v37  ;;  %v301_v41 = vadd.f32 %v300_v39, %v155_v34 }
 0x18b   :  { %1128 = vtanh.f32 %v340_v38  ;;  %v302_v42 = vpop.f32.mrf.mxu0  ;;  %v342_v43 = vpop.f32.mrf.mxu1 }
 0x18c   :  { %1130 = vtanh.f32 %v301_v41 }
 0x18d   :  { %v303_v29 = vpop.f32.mrf.mxu0  ;;  %v1004_v44 = vpop.f32.mrf.mxu1 }
 0x197   :  { %v1127_v47 = vpop.eup %1126 }
 0x198   :  { %v1129_v48 = vpop.eup %1128  ;;  %v1148_v51 = vpack.c.bf16 %v1127_v47, %v1127_v47 }
 0x199   :  { %v1131_v49 = vpop.eup %1130  ;;  %v981_v50 = vpack.c.bf16 %v1129_v48, %v1129_v48 }
 0x19a   :  { %v1149_v52 = vpack.c.bf16 %v1131_v49, %v1131_v49 }
 0x19b   :  { %362 = vst [vmem:[#allocation2 + $0x8] sm:$0xf] %v981_v50 }
 0x19c   :  { %742 = vmatprep.mubr.bf16.mxu0 %v1149_v52 }
 0x19d   :  { %743 = vmatmul.mubr.bf16.vlgmr.msra.gmra.mxu0 %v1148_v51 }
 0x1a2   :  { %v368_v53 = vld [vmem:[#allocation2 + $0x8] sm:$0xff] }
 0x1a3   :  { %v921_v54 = vcombine.high %v368_v53, %v368_v53  ;;  %v920_v55 = vcombine.low %v368_v53, %v368_v53 }
 0x1a5   :  { %974 = vmatprep.mubr.msk.bf16.mxu1 %vm706_vm6, %v921_v54 }
 0x1a6   :  { %784 = vmatmul.mubr.bf16.vlgmr.msra.gmra.mxu1 %v920_v55 }
 0x25d   :  { %v744_v57 = vpop.f32.mrf.mxu0 }
 0x25e   :  { %v745_v61 = vadd.f32 %v744_v57, %v426_v58 }
 0x25f   :  { %v746_v59 = vpop.f32.mrf.mxu0 }
 0x260   :  { %v747_v6 = vadd.f32 %v746_v59, %v430_v5 }
 0x261   :  { %v748_v60 = vpop.f32.mrf.mxu0 }
 0x263   :  { %v749_v62 = vpop.f32.mrf.mxu0 }
 0x266   :  { %v785_v63 = vpop.f32.mrf.mxu1 }
 0x267   :  { %v786_v0 = vadd.f32 %v785_v63, %v745_v61 }
 0x268   :  { %v787_v1 = vpop.f32.mrf.mxu1 }
 0x269   :  { %v975_v2 = vmul.f32 -1.442695, %v786_v0  ;;  %v788_v7 = vadd.f32 %v787_v1, %v747_v6 }
 0x26a   :  { %v789_v3 = vpop.f32.mrf.mxu1 }
 0x26b   :  { %1132 = vpow2.f32 %v975_v2  ;;  %v976_v13 = vmul.f32 -1.442695, %v788_v7 }
 0x26c   :  { %v790_v4 = vpop.f32.mrf.mxu1  ;;  %1134 = vtanh.f32 %v788_v7 }
 0x278   :  { %v1133_v8 = vpop.eup %1132 }
 0x279   :  { %v798_v9 = vadd.f32 1.0, %v1133_v8  ;;  %v1135_v10 = vpop.eup %1134 }
 0x27b   :  { %1136 = vrcp.f32 %v798_v9 }
 0x27c   :  { %1138 = vpow2.f32 %v976_v13 }
 0x288   :  { %v1137_v11 = vpop.eup %1136 }
 0x289   :  { %v816_v12 = vmul.f32 %v1137_v11, %v1135_v10  ;;  %v1139_v14 = vpop.eup %1138  ;;  %v815_v17 = vmul.f32 %v1137_v11, %v813_v15 }
 0x28a   :  { %v799_v16 = vadd.f32 1.0, %v1139_v14 }
 0x28b   :  { %818 = vrot.lane.b32.xlu0 %v816_v12, %s1270_s4 }
 0x28c   :  { %1140 = vrcp.f32 %v799_v16 }
 0x299   :  { %v1141_v20 = vpop.eup %1140 }
 0x2fd   :  { %v819_v18 = vpop.permute.xlu0 %818 }
 0x2fe   :  { %v821_v19 = vadd.f32 %v819_v18, %v815_v17 }
 0x300   :  { %1142 = vtanh.f32 %v821_v19 }
 0x30d   :  { %v1143_v21 = vpop.eup %1142 }
 0x30e   :  { %v823_v22 = vmul.f32 %v1143_v21, %v1141_v20 }
 0x310   :  { %830 = vrot.lane.b32.xlu1 %v823_v22, %s1270_s4 }
 0x314   :  { %835 = vrot.lane.b32.xlu1 %v821_v19, %s1270_s4 }
 0x382   :  { %v831_v26 = vpop.permute.xlu1 %830 }
 0x383   :  { %v833_v27 = vmul.f32 %v831_v26, %v828_v25 }
 0x385   :  { %840 = vrot.lane.b32.xlu0 %v833_v27, %s1271_s16 }
 0x386   :  { %v836_v28 = vpop.permute.xlu1 %835 }
 0x387   :  { %v838_v31 = vmul.f32 %v836_v28, %v828_v25 }
 0x389   :  { %845 = vrot.lane.b32.xlu1 %v838_v31, %s1271_s16 }
 0x3f7   :  { %v841_v32 = vpop.permute.xlu0 %840 }
 0x3f8   :  { %v843_v34 = vadd.f32 %v841_v32, %v833_v27 }
 0x3fa   :  { %v856_v35 = vmul.f32 %v977_v33, %v843_v34 }
 0x3fb   :  { %v846_v43 = vpop.permute.xlu1 %845 }
 0x3fc   :  { %v857_v36 = vsel %vm706_vm6, %v856_v35, 0.0  ;;  %v848_v29 = vadd.f32 %v846_v43, %v838_v31 }
 0x3fd   :  { %858 = vadd.xlane.f32.xlu0 %v857_v36 }
 0x486   :  { %v859_v37 = vpop.xlane.xlu0 %858 }
 0x487   :  { %v867_v38 = vadd.f32 %v978_v30, %v859_v37 }
 0x489   :  { %v979_v39 = vmul.f32 -1.442695, %v867_v38 }
 0x48b   :  { %1144 = vpow2.f32 %v979_v39 }
 0x498   :  { %v1145_v40 = vpop.eup %1144 }
 0x499   :  { %v871_v41 = vadd.f32 1.0, %v1145_v40 }
 0x49b   :  { %1146 = vrcp.f32 %v871_v41 }
 0x4a8   :  { %v1147_v42 = vpop.eup %1146 }
 0x4a9   :  { %876 = vperm.xlu1 %1022, %v1147_v42  }
 0x4ad   :  { %880 = vrot.lane.b32.xlu1 %v848_v29, %s1269_s30 }
 0x524   :  { %v877_v44 = vpop.permute.xlu1 %876 }
 0x528   :  { %v881_v45 = vpop.permute.xlu1 %880 }
 0x529   :  { %v883_v46 = vsel %vm706_vm6, %v843_v34, %v881_v45 }
 0x52a   :  { %v885_v47 = vsel %vm884_vm8, %v883_v46, %v877_v44 }
 0x52b   :  { %886 = vst [vmem:[%s1406_s11] sm:$0xff] %v885_v47 }
 0x52c   :  { %891 = vsyncpa [#allocation6], 1 }
 0x52d   :  { %892 = vsyncpa [#allocation8], 1 }
 0x52e   :  { %893 = vsyncpa [#allocation11], 1 }

</bundles_post_ra>
